<compile_context>
chip_gen: v7x
topology: tpu7x:2x2x1
jax: 0.10.0
libtpu: 0.0.40
codegen_flags: <defaults>
</compile_context>

<pallas_src>
import jax
import jax.numpy as jnp
from jax.experimental import pallas as pl
from jax.experimental.pallas import tpu as pltpu

LANE = 128            # vreg lane width: pad feature dims to multiples of this
_NEG_SLOPE = 0.1      # matches nn.LeakyReLU(0.1) in MyNN


def _round_up(n, m):
    return ((n + m - 1) // m) * m


def _leaky_relu(x, slope=_NEG_SLOPE):
    # one vmul + vmax instead of cmp + select
    return jnp.maximum(x, slope * x)


def mlp_kernel(x_ref, w1_ref, b1_ref, w2_ref, b2_ref, w3_ref, b3_ref, o_ref):
    x = x_ref[...]                                             # (TB, IN_p) bf16

    # hidden1 + LeakyReLU(0.1): bf16 MXU matmul, fp32 accumulation + fp32 bias
    h1 = jnp.dot(x, w1_ref[...], preferred_element_type=jnp.float32) + b1_ref[...]
    h1 = _leaky_relu(h1)

    # hidden2 + LeakyReLU(0.1)  (dropout = identity in eval mode)
    h2 = jnp.dot(h1.astype(w2_ref.dtype), w2_ref[...],
                 preferred_element_type=jnp.float32) + b2_ref[...]
    h2 = _leaky_relu(h2) + h1                                  # residual add (fp32)

    # output layer
    out = jnp.dot(h2.astype(w3_ref.dtype), w3_ref[...],
                  preferred_element_type=jnp.float32) + b3_ref[...]
    o_ref[...] = out.astype(o_ref.dtype)


def init_params(key, input_size, hidden_size, output_size):
    """Weights stored transposed ([in, out]) relative to PyTorch so the kernel does plain x @ W.
       xavier_normal_ for hidden1/hidden2, zeros biases; deterministic uniform for output layer."""
    k1, k2, k3, k4 = jax.random.split(key, 4)

    def xavier_normal(k, fan_in, fan_out):
        std = jnp.sqrt(2.0 / (fan_in + fan_out))
        return jax.random.normal(k, (fan_in, fan_out), jnp.float32) * std

    w1 = xavier_normal(k1, input_size, hidden_size)
    b1 = jnp.zeros((1, hidden_size), jnp.float32)
    w2 = xavier_normal(k2, hidden_size, hidden_size)
    b2 = jnp.zeros((1, hidden_size), jnp.float32)
    bound = 1.0 / jnp.sqrt(hidden_size)
    w3 = jax.random.uniform(k3, (hidden_size, output_size), jnp.float32, -bound, bound)
    b3 = jax.random.uniform(k4, (1, output_size), jnp.float32, -bound, bound)
    return {"w1": w1, "b1": b1, "w2": w2, "b2": b2, "w3": w3, "b3": b3}


def prepare_params(params, compute_dtype=jnp.bfloat16):
    """Pad feature dims to 128-lane multiples and cast weights to the MXU compute dtype once.
       Zero padding is exact: padded hidden columns stay 0 through LeakyReLU / residual and
       padded output columns are sliced off."""
    in_size, hid = params["w1"].shape
    out_size = params["w3"].shape[1]
    in_p = _round_up(in_size, LANE)
    hid_p = _round_up(hid, LANE)
    out_p = _round_up(out_size, LANE)

    def pad2(a, r, c):
        return jnp.pad(a, ((0, r - a.shape[0]), (0, c - a.shape[1])))

    return {
        "w1": pad2(params["w1"], in_p, hid_p).astype(compute_dtype),
        "b1": pad2(params["b1"], 1, hid_p).astype(jnp.float32),
        "w2": pad2(params["w2"], hid_p, hid_p).astype(compute_dtype),
        "b2": pad2(params["b2"], 1, hid_p).astype(jnp.float32),
        "w3": pad2(params["w3"], hid_p, out_p).astype(compute_dtype),
        "b3": pad2(params["b3"], 1, out_p).astype(jnp.float32),
        "dims": (in_size, hid, out_size),
        "padded_dims": (in_p, hid_p, out_p),
        "compute_dtype": compute_dtype,
    }


def mynn_forward(x, prepared, batch_tile=256):
    """x: [B, input_size] float32. Returns [B, output_size] float32."""
    in_size, hid, out_size = prepared["dims"]
    in_p, hid_p, out_p = prepared["padded_dims"]
    cdt = prepared["compute_dtype"]

    B = x.shape[0]
    # batch tile: multiple of 16 sublanes (bf16 packing), capped so VMEM stays bounded
    tb = min(batch_tile, _round_up(B, 16))
    b_pad = _round_up(B, tb)

    xp = jnp.pad(x, ((0, b_pad - B), (0, in_p - in_size))).astype(cdt)

    w1, b1, w2, b2, w3, b3 = (prepared[k] for k in ("w1", "b1", "w2", "b2", "w3", "b3"))

    # rough VMEM budget: resident weights/biases + double-buffered x/out tiles; stay
    # comfortably under v7x's 64 MiB physical VMEM (v5e/v6e have 128 MiB headroom).
    bytes_w = ((w1.size + w2.size + w3.size) * w1.dtype.itemsize
               + (b1.size + b2.size + b3.size) * 4)
    bytes_tiles = 2 * (tb * in_p * xp.dtype.itemsize + tb * out_p * 4)
    vmem_limit = int(min(max(2 * (bytes_w + bytes_tiles), 32 * 1024 * 1024),
                         48 * 1024 * 1024))

    resident = lambda i: (0, 0)   # weights / biases: same block every grid step -> VMEM-resident

    out_padded = pl.pallas_call(
        mlp_kernel,
        out_shape=jax.ShapeDtypeStruct((b_pad, out_p), jnp.float32),
        grid_spec=pltpu.PrefetchScalarGridSpec(
            num_scalar_prefetch=0,
            grid=(b_pad // tb,),
            in_specs=[
                pl.BlockSpec((tb, in_p), lambda i: (i, 0)),      # x tile streams
                pl.BlockSpec((in_p, hid_p), resident),           # w1
                pl.BlockSpec((1, hid_p), resident),              # b1
                pl.BlockSpec((hid_p, hid_p), resident),          # w2
                pl.BlockSpec((1, hid_p), resident),              # b2
                pl.BlockSpec((hid_p, out_p), resident),          # w3
                pl.BlockSpec((1, out_p), resident),              # b3
            ],
            out_specs=pl.BlockSpec((tb, out_p), lambda i: (i, 0)),
        ),
        compiler_params=pltpu.CompilerParams(
            dimension_semantics=("parallel",),    # batch tiles shard across v7x's 2 TCs
            vmem_limit_bytes=vmem_limit,
        ),
    )(xp, w1, b1, w2, b2, w3, b3)

    return out_padded[:B, :out_size]


def reference_forward(x, params, compute_dtype=jnp.bfloat16):
    """Pure-JAX reference mirroring the kernel numerics (bf16 operands, fp32 accumulation)."""
    f32 = jnp.float32

    def c(a):
        return a.astype(compute_dtype).astype(f32)

    h1 = _leaky_relu(c(x) @ c(params["w1"]) + params["b1"])
    h2 = _leaky_relu(c(h1) @ c(params["w2"]) + params["b2"]) + h1
    return c(h2) @ c(params["w3"]) + params["b3"]


if __name__ == "__main__":
    key = jax.random.PRNGKey(0)
    k_x, k_p = jax.random.split(key)

    batch, input_size, hidden_size, output_size = 8, 32, 32, 16
    x = jax.random.normal(k_x, (batch, input_size), jnp.float32)
    params = init_params(k_p, input_size, hidden_size, output_size)
    prepared = prepare_params(params, compute_dtype=jnp.bfloat16)

    out = mynn_forward(x, prepared)
    out = jax.block_until_ready(out)

    ref = reference_forward(x, params, compute_dtype=jnp.bfloat16)
    assert out.shape == (batch, output_size)
    err = jnp.max(jnp.abs(out - ref))
    assert jnp.allclose(out, ref, atol=1e-3, rtol=1e-3), f"mismatch vs reference (max abs err {err})"

    print("KERNEL_OK")
</pallas_src>

<mosaic_0001>
module attributes {stable_mosaic.version = 11 : i64} {
  func.func @mlp_kernel(%arg0: i32, %arg1: memref<16x128xbf16, #tpu.memory_space<vmem>>, %arg2: memref<128x128xbf16, #tpu.memory_space<vmem>>, %arg3: memref<1x128xf32, #tpu.memory_space<vmem>>, %arg4: memref<128x128xbf16, #tpu.memory_space<vmem>>, %arg5: memref<1x128xf32, #tpu.memory_space<vmem>>, %arg6: memref<128x128xbf16, #tpu.memory_space<vmem>>, %arg7: memref<1x128xf32, #tpu.memory_space<vmem>>, %arg8: memref<16x128xf32, #tpu.memory_space<vmem>>) attributes {dimension_semantics = [#tpu.dimension_semantics<parallel>], iteration_bounds = array<i64: 1>, scalar_prefetch = 0 : i64, scratch_operands = 0 : i64, tpu.core_type = #tpu.core_type<tc>, window_params = [{transform_indices = @transform_0, window_bounds = array<i64: 16, 128>}, {pipeline_mode = #tpu.pipeline_mode<synchronous>, transform_indices = @transform_1, window_bounds = array<i64: 128, 128>}, {pipeline_mode = #tpu.pipeline_mode<synchronous>, transform_indices = @transform_2, window_bounds = array<i64: 1, 128>}, {pipeline_mode = #tpu.pipeline_mode<synchronous>, transform_indices = @transform_3, window_bounds = array<i64: 128, 128>}, {pipeline_mode = #tpu.pipeline_mode<synchronous>, transform_indices = @transform_4, window_bounds = array<i64: 1, 128>}, {pipeline_mode = #tpu.pipeline_mode<synchronous>, transform_indices = @transform_5, window_bounds = array<i64: 128, 128>}, {pipeline_mode = #tpu.pipeline_mode<synchronous>, transform_indices = @transform_6, window_bounds = array<i64: 1, 128>}, {transform_indices = @transform_7, window_bounds = array<i64: 16, 128>}]} {
    %c0 = arith.constant 0 : index
    %c0_0 = arith.constant 0 : index
    %0 = vector.load %arg1[%c0, %c0_0] : memref<16x128xbf16, #tpu.memory_space<vmem>>, vector<16x128xbf16>
    %c0_1 = arith.constant 0 : index
    %c0_2 = arith.constant 0 : index
    %1 = vector.load %arg2[%c0_1, %c0_2] : memref<128x128xbf16, #tpu.memory_space<vmem>>, vector<128x128xbf16>
    %cst = arith.constant dense<0.000000e+00> : vector<16x128xf32>
    %2 = tpu.matmul %0, %1, %cst {dimension_numbers = #tpu.dot_dimension_numbers<[1], [0], [0], [1], [0, 0, 1, 1], [], []>} : vector<16x128xbf16>, vector<128x128xbf16>, vector<16x128xf32> -> vector<16x128xf32>
    %c0_3 = arith.constant 0 : index
    %c0_4 = arith.constant 0 : index
    %3 = vector.load %arg3[%c0_3, %c0_4] : memref<1x128xf32, #tpu.memory_space<vmem>>, vector<1x128xf32>
    %4 = vector.broadcast %3 : vector<1x128xf32> to vector<16x128xf32>
    %5 = arith.addf %2, %4 : vector<16x128xf32>
    %cst_5 = arith.constant 1.000000e-01 : f32
    %6 = vector.broadcast %cst_5 : f32 to vector<16x128xf32>
    %7 = arith.mulf %6, %5 : vector<16x128xf32>
    %8 = arith.maximumf %5, %7 : vector<16x128xf32>
    %9 = arith.truncf %8 : vector<16x128xf32> to vector<16x128xbf16>
    %c0_6 = arith.constant 0 : index
    %c0_7 = arith.constant 0 : index
    %10 = vector.load %arg4[%c0_6, %c0_7] : memref<128x128xbf16, #tpu.memory_space<vmem>>, vector<128x128xbf16>
    %cst_8 = arith.constant dense<0.000000e+00> : vector<16x128xf32>
    %11 = tpu.matmul %9, %10, %cst_8 {dimension_numbers = #tpu.dot_dimension_numbers<[1], [0], [0], [1], [0, 0, 1, 1], [], []>} : vector<16x128xbf16>, vector<128x128xbf16>, vector<16x128xf32> -> vector<16x128xf32>
    %c0_9 = arith.constant 0 : index
    %c0_10 = arith.constant 0 : index
    %12 = vector.load %arg5[%c0_9, %c0_10] : memref<1x128xf32, #tpu.memory_space<vmem>>, vector<1x128xf32>
    %13 = vector.broadcast %12 : vector<1x128xf32> to vector<16x128xf32>
    %14 = arith.addf %11, %13 : vector<16x128xf32>
    %cst_11 = arith.constant 1.000000e-01 : f32
    %15 = vector.broadcast %cst_11 : f32 to vector<16x128xf32>
    %16 = arith.mulf %15, %14 : vector<16x128xf32>
    %17 = arith.maximumf %14, %16 : vector<16x128xf32>
    %18 = arith.addf %17, %8 : vector<16x128xf32>
    %19 = arith.truncf %18 : vector<16x128xf32> to vector<16x128xbf16>
    %c0_12 = arith.constant 0 : index
    %c0_13 = arith.constant 0 : index
    %20 = vector.load %arg6[%c0_12, %c0_13] : memref<128x128xbf16, #tpu.memory_space<vmem>>, vector<128x128xbf16>
    %cst_14 = arith.constant dense<0.000000e+00> : vector<16x128xf32>
    %21 = tpu.matmul %19, %20, %cst_14 {dimension_numbers = #tpu.dot_dimension_numbers<[1], [0], [0], [1], [0, 0, 1, 1], [], []>} : vector<16x128xbf16>, vector<128x128xbf16>, vector<16x128xf32> -> vector<16x128xf32>
    %c0_15 = arith.constant 0 : index
    %c0_16 = arith.constant 0 : index
    %22 = vector.load %arg7[%c0_15, %c0_16] : memref<1x128xf32, #tpu.memory_space<vmem>>, vector<1x128xf32>
    %23 = vector.broadcast %22 : vector<1x128xf32> to vector<16x128xf32>
    %24 = arith.addf %21, %23 : vector<16x128xf32>
    %c0_17 = arith.constant 0 : index
    %c0_18 = arith.constant 0 : index
    %25 = vector.load %arg8[%c0_17, %c0_18] : memref<16x128xf32, #tpu.memory_space<vmem>>, vector<16x128xf32>
    tpu.vector_store %arg8[%c0_17, %c0_18], %24 {strides = array<i32>} : memref<16x128xf32, #tpu.memory_space<vmem>>, vector<16x128xf32>,
    return
  }
  func.func @transform_0(%arg0: i32) -> (i32, i32) {
    %c0_i32 = arith.constant 0 : i32
    %c0_i32_0 = arith.constant 0 : i32
    return %arg0, %c0_i32 : i32, i32
  }
  func.func @transform_1(%arg0: i32) -> (i32, i32) {
    %c0_i32 = arith.constant 0 : i32
    %c0_i32_0 = arith.constant 0 : i32
    %c0_i32_1 = arith.constant 0 : i32
    return %c0_i32, %c0_i32_0 : i32, i32
  }
  func.func @transform_2(%arg0: i32) -> (i32, i32) {
    %c0_i32 = arith.constant 0 : i32
    %c0_i32_0 = arith.constant 0 : i32
    %c0_i32_1 = arith.constant 0 : i32
    return %c0_i32, %c0_i32_0 : i32, i32
  }
  func.func @transform_3(%arg0: i32) -> (i32, i32) {
    %c0_i32 = arith.constant 0 : i32
    %c0_i32_0 = arith.constant 0 : i32
    %c0_i32_1 = arith.constant 0 : i32
    return %c0_i32, %c0_i32_0 : i32, i32
  }
  func.func @transform_4(%arg0: i32) -> (i32, i32) {
    %c0_i32 = arith.constant 0 : i32
    %c0_i32_0 = arith.constant 0 : i32
    %c0_i32_1 = arith.constant 0 : i32
    return %c0_i32, %c0_i32_0 : i32, i32
  }
  func.func @transform_5(%arg0: i32) -> (i32, i32) {
    %c0_i32 = arith.constant 0 : i32
    %c0_i32_0 = arith.constant 0 : i32
    %c0_i32_1 = arith.constant 0 : i32
    return %c0_i32, %c0_i32_0 : i32, i32
  }
  func.func @transform_6(%arg0: i32) -> (i32, i32) {
    %c0_i32 = arith.constant 0 : i32
    %c0_i32_0 = arith.constant 0 : i32
    %c0_i32_1 = arith.constant 0 : i32
    return %c0_i32, %c0_i32_0 : i32, i32
  }
  func.func @transform_7(%arg0: i32) -> (i32, i32) {
    %c0_i32 = arith.constant 0 : i32
    %c0_i32_0 = arith.constant 0 : i32
    return %arg0, %c0_i32 : i32, i32
  }
}

</mosaic_0001>

<bundles_post_ra>
// kernel: tpu_custom_call.1
= control target key start
LH: loop header
LB: loop body
LE: loop exit
PB: predicated region body
PF: predicated region fallthrough
CT: control target
= control target key end

     0   :  { %12 = vsyncpa [#allocation3], 0  ;;  %s905_s0 = inlined_call_operand.hbm [shape: bf16[16,128], index: 0, kind: input, shape index: {}]   ;;  %s906_s1 = inlined_call_operand.hbm [shape: bf16[128,128], index: 1, kind: input, shape index: {}]   ;;  %s907_s2 = inlined_call_operand.vmem [shape: f32[1,128], index: 2, kind: input, shape index: {}]   ;;  %s908_s3 = inlined_call_operand.hbm [shape: bf16[128,128], index: 3, kind: input, shape index: {}]   ;;  %s909_s4 = inlined_call_operand.vmem [shape: f32[1,128], index: 4, kind: input, shape index: {}]   ;;  %s910_s5 = inlined_call_operand.hbm [shape: bf16[128,128], index: 5, kind: input, shape index: {}]   ;;  %s911_s6 = inlined_call_operand.vmem [shape: f32[1,128], index: 6, kind: input, shape index: {}]   ;;  %s912_s7 = inlined_call_operand.hbm [shape: f32[16,128], index: 7, kind: output, shape index: {}]  }
   0x1   :  { %13 = vsyncpa [#allocation6], 0 }
   0x2   :  { %14 = vsyncpa [#allocation9], 0 }
   0x3   :  { %15 = vsyncpa [#allocation4], 0  ;;  %s729_s24 = smov [#allocation5]   ;;  %s730_s26 = smov [#allocation2]  }
   0x4   :  { %s33_s25 = sshll.u32 %s729_s24, 4  ;;  %s21_s27 = sshll.u32 %s730_s26, 4  ;;  %s34_s25 = int_to_ptr.vmem [resolvable:$true] %s33_s25  ;;  %s780_s27 = int_to_ptr.vmem [resolvable:$true] %s21_s27 }
   0x5   :  { %s611_s30 = scalar_lea.hbm %s906_s1, 1024 }
   0x6   :  { %p612_p0 = scmp.ne.s32.totalorder %s906_s1, %s611_s30  ;;  %p615_p1 = scmp.lt.u32.totalorder %s611_s30, %s906_s1 }
   0x8   :  { %p617_p2 = pnand %p615_p1, %p612_p0 }
   0xa   :  { %620 = shalt.err (!%p617_p2)
}
   0xb   :  { %s621_s12 = scalar_lea.vmem %s34_s25, 1024  ;;  %p626_p4 = scmp.lt.s32.totalorder %s34_s25, %s34_s25 }
   0xc   :  { %p622_p3 = scmp.ne.s32.totalorder %s34_s25, %s621_s12  ;;  %p627_p5 = scmp.lt.s32.totalorder %s621_s12, %s621_s12 }
   0xe   :  { %p628_p6 = por %p627_p5, %p626_p4 }
  0x10   :  { %p629_p7 = pnand %p628_p6, %p622_p3 }
  0x12   :  { %632 = shalt.err (!%p629_p7)
}
  0x13   :  { %s731_s13 = smov 64   ;;  %s732_s14 = smov 4  }
  0x14   :  { %39 = dma.hbm_to_vmem [thread:$0]  %s906_s1, 1024, %s34_s25, [#allocation6], %s731_s13, %s731_s13, %s732_s14  }
  0x15   :  { %s633_s19 = scalar_lea.hbm %s905_s0, 128 }
  0x16   :  { %p634_p8 = scmp.ne.s32.totalorder %s905_s0, %s633_s19  ;;  %p637_p9 = scmp.lt.u32.totalorder %s633_s19, %s905_s0 }
  0x18   :  { %p639_p10 = pnand %p637_p9, %p634_p8 }
  0x1a   :  { %642 = shalt.err (!%p639_p10)
}
  0x1b   :  { %s643_s24 = scalar_lea.vmem %s780_s27, 128  ;;  %p648_p12 = scmp.lt.s32.totalorder %s780_s27, %s780_s27 }
  0x1c   :  { %p644_p11 = scmp.ne.s32.totalorder %s780_s27, %s643_s24  ;;  %p649_p13 = scmp.lt.s32.totalorder %s643_s24, %s643_s24 }
  0x1e   :  { %p650_p0 = por %p649_p13, %p648_p12 }
  0x20   :  { %p651_p1 = pnand %p650_p0, %p644_p11 }
  0x22   :  { %654 = shalt.err (!%p651_p1)
}
  0x23   :  { %27 = dma.hbm_to_vmem [thread:$0]  %s905_s0, 128, %s780_s27, [#allocation3], %s731_s13, %s731_s13, %s732_s14  }
  0x24   :  { %s733_s26 = smov [#allocation7]   ;;  %s734_s29 = smov [#allocation8]  }
  0x25   :  { %s47_s28 = sshll.u32 %s733_s26, 4  ;;  %s61_s30 = sshll.u32 %s734_s29, 4  ;;  %s48_s28 = int_to_ptr.vmem [resolvable:$true] %s47_s28  ;;  %s817_s30 = int_to_ptr.vmem [resolvable:$true] %s61_s30 }
  0x26   :  { %s655_s10 = scalar_lea.hbm %s908_s3, 1024 }
  0x27   :  { %p656_p2 = scmp.ne.s32.totalorder %s908_s3, %s655_s10  ;;  %p659_p3 = scmp.lt.u32.totalorder %s655_s10, %s908_s3 }
  0x29   :  { %p661_p4 = pnand %p659_p3, %p656_p2 }
  0x2b   :  { %664 = shalt.err (!%p661_p4)
}
  0x2c   :  { %s665_s0 = scalar_lea.vmem %s48_s28, 1024  ;;  %p670_p6 = scmp.lt.s32.totalorder %s48_s28, %s48_s28 }
  0x2d   :  { %p666_p5 = scmp.ne.s32.totalorder %s48_s28, %s665_s0  ;;  %p671_p7 = scmp.lt.s32.totalorder %s665_s0, %s665_s0 }
  0x2f   :  { %p672_p8 = por %p671_p7, %p670_p6 }
  0x31   :  { %p673_p9 = pnand %p672_p8, %p666_p5 }
  0x33   :  { %676 = shalt.err (!%p673_p9)
}
  0x34   :  { %53 = dma.hbm_to_vmem [thread:$0]  %s908_s3, 1024, %s48_s28, [#allocation6], %s731_s13, %s731_s13, %s732_s14  }
  0x35   :  { %s677_s20 = scalar_lea.hbm %s910_s5, 1024 }
  0x36   :  { %p678_p10 = scmp.ne.s32.totalorder %s910_s5, %s677_s20  ;;  %p681_p11 = scmp.lt.u32.totalorder %s677_s20, %s910_s5 }
  0x38   :  { %p683_p12 = pnand %p681_p11, %p678_p10 }
  0x3a   :  { %686 = shalt.err (!%p683_p12)
}
  0x3b   :  { %s687_s1 = scalar_lea.vmem %s817_s30, 1024  ;;  %p692_p0 = scmp.lt.s32.totalorder %s817_s30, %s817_s30 }
  0x3c   :  { %p688_p13 = scmp.ne.s32.totalorder %s817_s30, %s687_s1  ;;  %p693_p1 = scmp.lt.s32.totalorder %s687_s1, %s687_s1 }
  0x3e   :  { %p694_p2 = por %p693_p1, %p692_p0 }
  0x40   :  { %p695_p3 = pnand %p694_p2, %p688_p13 }
  0x42   :  { %698 = shalt.err (!%p695_p3)
}
  0x43   :  { %67 = dma.hbm_to_vmem [thread:$0]  %s910_s5, 1024, %s817_s30, [#allocation9], %s731_s13, %s731_s13, %s732_s14  }
  0x44   :  { %721 = dma.done.wait [#allocation3], 128  }
  0x45   :  { %722 = vsyncadd [#allocation3], 4294967168 }
  0x46   :  { %723 = dma.done.wait [#allocation6], 2048  }
  0x47   :  { %724 = vsyncadd [#allocation6], 4294965248 }
  0x48   :  { %725 = dma.done.wait [#allocation9], 1024  }
  0x49   :  { %726 = vsyncadd [#allocation9], 4294966272  ;;  %v735_v0 = vmov 0.0   ;;  %vm736_vm0 = vmmov 0   ;;  %v586_v1 = vld [vmem:[#allocation5] sm:$0xff]   ;;  %v587_v2 = vld [vmem:[#allocation5 + $0x8] sm:$0xff]  }
  0x4a   :  { %515 = vmatprep.subr.bf16.mxu0 %v735_v0  ;;  %531 = vmatprep.mubr.msk.bf16.mxu0 %vm736_vm0, %v735_v0  ;;  %v588_v3 = vld [vmem:[#allocation5 + $0x10] sm:$0xff]   ;;  %v595_v4 = vld [vmem:[#allocation7] sm:$0xff]   ;;  %v589_v5 = vld [vmem:[#allocation5 + $0x18] sm:$0xff]   ;;  %s737_s29 = smov [#allocation10]  }
  0x4b   :  { %535 = vmatprep.subr.bf16.mxu1 %v735_v0  ;;  %551 = vmatprep.mubr.msk.bf16.mxu1 %vm736_vm0, %v735_v0  ;;  %v596_v6 = vld [vmem:[#allocation7 + $0x8] sm:$0xff]   ;;  %v590_v7 = vld [vmem:[#allocation5 + $0x20] sm:$0xff]   ;;  %v597_v8 = vld [vmem:[#allocation7 + $0x10] sm:$0xff]  }
  0x4c   :  { %516 = vmatpush3.bf16.msra.mxu0 %v586_v1  ;;  %536 = vmatpush3.bf16.msra.mxu1 %v595_v4  ;;  %v591_v9 = vld [vmem:[#allocation5 + $0x28] sm:$0xff]   ;;  %v598_v10 = vld [vmem:[#allocation7 + $0x18] sm:$0xff]   ;;  %v592_v11 = vld [vmem:[#allocation5 + $0x30] sm:$0xff]  }
  0x4d   :  { %517 = vmatprep.subr.bf16.mxu0 %v735_v0  ;;  %537 = vmatprep.subr.bf16.mxu1 %v735_v0  ;;  %v599_v12 = vld [vmem:[#allocation7 + $0x20] sm:$0xff]   ;;  %v593_v13 = vld [vmem:[#allocation5 + $0x38] sm:$0xff]   ;;  %v600_v15 = vld [vmem:[#allocation7 + $0x28] sm:$0xff]  }
  0x4e   :  { %v594_v14 = vld [vmem:[#allocation2] sm:$0xff]   ;;  %v601_v16 = vld [vmem:[#allocation7 + $0x30] sm:$0xff]   ;;  %v603_v18 = vld [vmem:[#allocation8] sm:$0xff]  }
  0x4f   :  { %v602_v17 = vld [vmem:[#allocation7 + $0x38] sm:$0xff]   ;;  %v604_v19 = vld [vmem:[#allocation8 + $0x8] sm:$0xff]   ;;  %v605_v20 = vld [vmem:[#allocation8 + $0x10] sm:$0xff]  }
  0x50   :  { %518 = vmatpush3.bf16.msra.mxu0 %v587_v2  ;;  %538 = vmatpush3.bf16.msra.mxu1 %v596_v6  ;;  %v606_v21 = vld [vmem:[#allocation8 + $0x18] sm:$0xff]   ;;  %v607_v22 = vld [vmem:[#allocation8 + $0x20] sm:$0xff]   ;;  %v608_v35 = vld [vmem:[#allocation8 + $0x28] sm:$0xff]  }
  0x51   :  { %519 = vmatprep.subr.bf16.mxu0 %v735_v0  ;;  %539 = vmatprep.subr.bf16.mxu1 %v735_v0  ;;  %v460_v23 = vld [vmem:[%s907_s2] ss:$0 sm:$0xff]  ;;  %v609_v36 = vld [vmem:[#allocation8 + $0x30] sm:$0xff]  }
  0x52   :  { %v610_v37 = vld [vmem:[#allocation8 + $0x38] sm:$0xff]  }
  0x53   :  { %v470_v38 = vld [vmem:[%s909_s4] ss:$0 sm:$0xff]  ;;  %s446_s4 = sshll.u32 %s737_s29, 4  ;;  %s447_s4 = int_to_ptr.vmem [resolvable:$true] %s446_s4 }
  0x54   :  { %520 = vmatpush3.bf16.msra.mxu0 %v588_v3  ;;  %540 = vmatpush3.bf16.msra.mxu1 %v597_v8  ;;  %v479_v52 = vld [vmem:[%s911_s6] ss:$0 sm:$0xff]  ;;  %s699_s30 = scalar_lea.vmem %s447_s4, 256  ;;  %p704_p5 = scmp.lt.s32.totalorder %s447_s4, %s447_s4 }
  0x55   :  { %521 = vmatprep.subr.bf16.mxu0 %v735_v0  ;;  %541 = vmatprep.subr.bf16.mxu1 %v735_v0  ;;  %p700_p4 = scmp.ne.s32.totalorder %s447_s4, %s699_s30  ;;  %p705_p6 = scmp.lt.s32.totalorder %s699_s30, %s699_s30 }
  0x57   :  { %p706_p7 = por %p705_p6, %p704_p5 }
  0x58   :  { %522 = vmatpush3.bf16.msra.mxu0 %v589_v5  ;;  %542 = vmatpush3.bf16.msra.mxu1 %v598_v10 }
  0x59   :  { %523 = vmatprep.subr.bf16.mxu0 %v735_v0  ;;  %543 = vmatprep.subr.bf16.mxu1 %v735_v0  ;;  %p707_p8 = pnand %p706_p7, %p700_p4 }
  0x5c   :  { %524 = vmatpush3.bf16.msra.mxu0 %v590_v7  ;;  %544 = vmatpush3.bf16.msra.mxu1 %v599_v12 }
  0x5d   :  { %525 = vmatprep.subr.bf16.mxu0 %v735_v0  ;;  %545 = vmatprep.subr.bf16.mxu1 %v735_v0 }
  0x60   :  { %526 = vmatpush3.bf16.msra.mxu0 %v591_v9  ;;  %546 = vmatpush3.bf16.msra.mxu1 %v600_v15 }
  0x61   :  { %527 = vmatprep.subr.bf16.mxu0 %v735_v0  ;;  %547 = vmatprep.subr.bf16.mxu1 %v735_v0 }
  0x64   :  { %528 = vmatpush3.bf16.msra.mxu0 %v592_v11  ;;  %548 = vmatpush3.bf16.msra.mxu1 %v601_v16 }
  0x65   :  { %529 = vmatprep.subr.bf16.mxu0 %v735_v0  ;;  %549 = vmatprep.subr.bf16.mxu1 %v735_v0 }
  0x68   :  { %530 = vmatpush3.bf16.msra.mxu0 %v593_v13  ;;  %550 = vmatpush3.bf16.msra.mxu1 %v602_v17 }
  0x69   :  { %555 = vmatprep.subr.bf16.mxu0 %v735_v0 }
  0x6b   :  { %532 = vmatmul.mubr.bf16.vlgmr.msra.gmra.mrb[0].mxu0 %v594_v14 }
  0x6c   :  { %571 = vmatprep.mubr.msk.bf16.mxu0 %vm736_vm0, %v735_v0  ;;  %556 = vmatpush3.bf16.msra.mxu0 %v603_v18 }
  0x6d   :  { %557 = vmatprep.subr.bf16.mxu0 %v735_v0 }
  0x70   :  { %558 = vmatpush3.bf16.msra.mxu0 %v604_v19 }
  0x71   :  { %559 = vmatprep.subr.bf16.mxu0 %v735_v0 }
  0x74   :  { %560 = vmatpush3.bf16.msra.mxu0 %v605_v20 }
  0x75   :  { %561 = vmatprep.subr.bf16.mxu0 %v735_v0 }
  0x78   :  { %562 = vmatpush3.bf16.msra.mxu0 %v606_v21 }
  0x79   :  { %563 = vmatprep.subr.bf16.mxu0 %v735_v0 }
  0x7c   :  { %564 = vmatpush3.bf16.msra.mxu0 %v607_v22 }
  0x7d   :  { %565 = vmatprep.subr.bf16.mxu0 %v735_v0 }
  0x80   :  { %566 = vmatpush3.bf16.msra.mxu0 %v608_v35 }
  0x81   :  { %567 = vmatprep.subr.bf16.mxu0 %v735_v0 }
  0x84   :  { %568 = vmatpush3.bf16.msra.mxu0 %v609_v36 }
  0x85   :  { %569 = vmatprep.subr.bf16.mxu0 %v735_v0 }
  0x88   :  { %570 = vmatpush3.bf16.msra.mxu0 %v610_v37 }
 0x13e   :  { %v196_v24 = vpop.f32.mrb[0].mxu0 }
 0x13f   :  { %v197_v25 = vadd.f32 %v460_v23, %v196_v24  ;;  %v533_v26 = vpop.f32.mrb[1].mxu0 }
 0x140   :  { %v199_v27 = vpop.f32.mrb[2].mxu0 }
 0x141   :  { %v203_v28 = vmul.f32 0.1, %v197_v25  ;;  %v200_v29 = vadd.f32 %v460_v23, %v199_v27  ;;  %v534_v30 = vpop.f32.mrb[3].mxu0 }
 0x143   :  { %v204_v31 = vmul.f32 0.1, %v200_v29  ;;  %v205_v32 = vmax.f32 %v197_v25, %v203_v28 }
 0x145   :  { %v206_v33 = vmax.f32 %v200_v29, %v204_v31 }
 0x147   :  { %v207_v34 = vpack.c.bf16 %v206_v33, %v205_v32 }
 0x149   :  { %552 = vmatmul.mubr.bf16.vlgmr.msra.gmra.mrb[0].mxu1 %v207_v34 }
 0x21c   :  { %v313_v39 = vpop.f32.mrb[0].mxu1 }
 0x21d   :  { %v314_v40 = vadd.f32 %v470_v38, %v313_v39  ;;  %v553_v41 = vpop.f32.mrb[1].mxu1 }
 0x21e   :  { %v316_v42 = vpop.f32.mrb[2].mxu1 }
 0x21f   :  { %v320_v43 = vmul.f32 0.1, %v314_v40  ;;  %v317_v44 = vadd.f32 %v470_v38, %v316_v42  ;;  %v554_v45 = vpop.f32.mrb[3].mxu1 }
 0x221   :  { %v322_v46 = vmax.f32 %v314_v40, %v320_v43  ;;  %v321_v47 = vmul.f32 0.1, %v317_v44 }
 0x223   :  { %v323_v48 = vmax.f32 %v317_v44, %v321_v47  ;;  %v324_v49 = vadd.f32 %v322_v46, %v205_v32 }
 0x225   :  { %v325_v50 = vadd.f32 %v323_v48, %v206_v33 }
 0x227   :  { %v326_v51 = vpack.c.bf16 %v325_v50, %v324_v49 }
 0x229   :  { %572 = vmatmul.mubr.bf16.vlgmr.msra.gmra.mrb[4].mxu0 %v326_v51 }
 0x2fc   :  { %v432_v53 = vpop.f32.mrb[4].mxu0 }
 0x2fd   :  { %v433_v54 = vadd.f32 %v479_v52, %v432_v53  ;;  %v573_v55 = vpop.f32.mrb[5].mxu0 }
 0x2fe   :  { %v435_v56 = vpop.f32.mrb[6].mxu0 }
 0x2ff   :  { %439 = vst [vmem:[#allocation10] sm:$0xff] %v433_v54  ;;  %v436_v57 = vadd.f32 %v479_v52, %v435_v56  ;;  %v574_v58 = vpop.f32.mrb[7].mxu0 }
 0x301   :  { %440 = vst [vmem:[#allocation10 + $0x8] sm:$0xff] %v436_v57 }
 0x302   :  { %710 = shalt.err (!%p707_p8)
}
 0x303   :  { %s711_s9 = scalar_lea.hbm %s912_s7, 256 }
 0x304   :  { %p712_p9 = scmp.ne.s32.totalorder %s912_s7, %s711_s9  ;;  %p715_p10 = scmp.lt.u32.totalorder %s711_s9, %s912_s7 }
 0x306   :  { %p717_p11 = pnand %p715_p10, %p712_p9 }
 0x308   :  { %720 = shalt.err (!%p717_p11)
}
 0x309   :  { %s738_s16 = smov 128   ;;  %s739_s0 = smov 8  }
 0x30a   :  { %452 = dma.vmem_to_hbm [thread:$0]  %s447_s4, 256, %s912_s7, [#allocation4], %s738_s16, %s738_s16, %s739_s0  }
 0x30b   :  { %727 = dma.done.wait [#allocation4], 256  }
 0x30c   :  { %728 = vsyncadd [#allocation4], 4294967040 }
 0x30d   :  { %456 = vsyncpa [#allocation3], 1 }
 0x30e   :  { %457 = vsyncpa [#allocation6], 1 }
 0x30f   :  { %458 = vsyncpa [#allocation9], 1 }
 0x310   :  { %459 = vsyncpa [#allocation4], 1 }

</bundles_post_ra>
